<compile_context>
chip_gen: v7x
topology: tpu7x:2x2x1
jax: 0.10.0
libtpu: 0.0.40
codegen_flags: <defaults>
</compile_context>

<pallas_src>
import functools

import jax
import jax.numpy as jnp
from jax.experimental import pallas as pl
from jax.experimental.pallas import tpu as pltpu


_PALLAS_MIN_ELEMENTS = 1 << 20            # below this, plain jnp (XLA fusion wins)
_TARGET_TILE_BYTES = 4 * 1024 * 1024      # ~4 MiB per array per grid step
_LANE_TILE = 8192                         # lane-axis tile when rows are very wide
_VMEM_LIMIT_BYTES = 48 * 1024 * 1024      # < 64 MiB physical VMEM on v7x; ample elsewhere
# Preferred lane-dense slab widths for the flatten path (review suggests ~1024-2048).
_FLATTEN_WIDTHS = (1024, 2048, 512, 4096, 8192, 256, 128)


def _param_loss_kernel(out_ref, gt_ref, valid_ref, loss_ref, *, compute_dtype):
    """loss = |param_out - param_gt| * valid, all casts done in-kernel (free VPU work)."""
    x = out_ref[...].astype(compute_dtype)
    g = gt_ref[...].astype(compute_dtype)
    v = valid_ref[...].astype(compute_dtype)   # (TM, 1) or (TM, TN); broadcast is free
    loss_ref[...] = (jnp.abs(x - g) * v).astype(loss_ref.dtype)


@functools.lru_cache(maxsize=1)
def _vpu_lacks_native_bf16():
    """True on pre-v6 TPUs whose VPU has no native bf16 path (compute in f32 there)."""
    try:
        kind = jax.devices()[0].device_kind.lower()
    except Exception:
        return True
    return any(tag in kind for tag in ("v2", "v3", "v4", "v5"))


def _pick_compute_dtype(out_dtype):
    d = jnp.dtype(out_dtype)
    if jnp.issubdtype(d, jnp.floating) and d.itemsize < 4:
        if d == jnp.dtype(jnp.bfloat16) and not _vpu_lacks_native_bf16():
            return jnp.bfloat16        # v6e / v7x: stay in bf16, halve vreg footprint
        return jnp.float32             # v5e (and fp16 anywhere): compute in f32
    return d


def _sublane_align(*dtypes):
    """Second-to-last block-dim alignment: 8 for 32-bit, 16 for bf16, 32 for int8."""
    align = 8
    for dt in dtypes:
        isz = max(1, jnp.dtype(dt).itemsize)
        align = max(align, 8 * (4 // isz))
    return align


def _choose_tiles(M, N, itemsize, align):
    """Lane-dense tiles of ~_TARGET_TILE_BYTES per array, sublane/lane aligned."""
    if N % 128 == 0 and N > _LANE_TILE:
        tile_n = _LANE_TILE            # also tile the lane axis for very wide rows
    else:
        tile_n = N                     # full-dim block (lane-dense whenever 128 | N)
    rows = _TARGET_TILE_BYTES // max(1, tile_n * itemsize)
    if rows >= M:
        return M, tile_n
    tile_m = min(M, max(align, (rows // align) * align))
    return tile_m, tile_n


def _pallas_loss_2d(p_out, p_gt, valid, *, out_dtype, compute_dtype,
                    tile_m=None, tile_n=None):
    """Streaming |a-b|*v over a 2-D (M, N) slab; valid is (M, 1) or (M, N)."""
    M, N = p_out.shape
    Nv = valid.shape[1]

    itemsize = max(jnp.dtype(p_out.dtype).itemsize,
                   jnp.dtype(p_gt.dtype).itemsize,
                   jnp.dtype(out_dtype).itemsize)
    dtypes_for_align = [p_out.dtype, p_gt.dtype, out_dtype]
    if Nv != 1:
        dtypes_for_align.append(valid.dtype)     # full-width narrow mask constrains sublanes
    align = _sublane_align(*dtypes_for_align)

    auto_m, auto_n = _choose_tiles(M, N, itemsize, align)
    if tile_m is None:
        tile_m = auto_m
    else:
        tile_m = int(tile_m)
        if tile_m < M:                           # keep user overrides sublane-legal
            tile_m = min(M, max(align, (tile_m // align) * align))
        else:
            tile_m = M
    tile_n = int(tile_n) if tile_n is not None else auto_n

    grid = (pl.cdiv(M, tile_m), pl.cdiv(N, tile_n))
    data_spec = pl.BlockSpec((tile_m, tile_n), lambda i, j: (i, j))
    if Nv == 1:
        valid_spec = pl.BlockSpec((tile_m, 1), lambda i, j: (i, 0))     # skinny per-row mask
    else:
        valid_spec = pl.BlockSpec((tile_m, tile_n), lambda i, j: (i, j))

    kernel = functools.partial(_param_loss_kernel, compute_dtype=compute_dtype)

    return pl.pallas_call(
        kernel,
        out_shape=jax.ShapeDtypeStruct((M, N), out_dtype),
        grid=grid,
        in_specs=[data_spec, data_spec, valid_spec],
        out_specs=data_spec,
        compiler_params=pltpu.CompilerParams(
            # "parallel" on both axes: no-op on single-TC v5e/v6e; lets v7x's two
            # TensorCores both stream.  If a v7x trace ever shows one idle TC,
            # switch the row axis to pltpu.CORE_PARALLEL.
            dimension_semantics=("parallel", "parallel"),
            vmem_limit_bytes=_VMEM_LIMIT_BYTES,
        ),
    )(p_out, p_gt, valid)


def param_loss(param_out, param_gt, valid, *, force_pallas=False,
               tile_m=None, tile_n=None):
    """ParamLoss.forward: |param_out - param_gt| * valid.

    param_out, param_gt: (B, D) arrays (any float/int dtype; streamed untouched).
    valid: (B, 1), (B,), (1, 1), (1, D) or (B, D) mask (bool/int/float).
    """
    param_out = jnp.asarray(param_out)
    param_gt = jnp.asarray(param_gt)
    valid = jnp.asarray(valid)
    if param_out.ndim != 2 or param_gt.shape != param_out.shape:
        raise ValueError("param_loss expects matching (B, D) parameter arrays")
    B, D = param_out.shape

    out_dtype = jnp.result_type(param_out.dtype, param_gt.dtype, valid.dtype)

    # Per-sample mask passed as (B,): the module's intended use is one flag per row.
    if valid.ndim == 1:
        valid = valid[:, None]

    # Tiny problem: plain jnp fuses into neighboring ops; Pallas would be pure overhead.
    if not force_pallas and B * D < _PALLAS_MIN_ELEMENTS:
        return (jnp.abs(param_out.astype(out_dtype) - param_gt.astype(out_dtype))
                * valid.astype(out_dtype))

    compute_dtype = _pick_compute_dtype(out_dtype)

    # Keep the mask narrow; bool -> int8 (1 byte, cast to compute dtype in-kernel).
    if valid.dtype == jnp.dtype(jnp.bool_):
        valid = valid.astype(jnp.int8)

    def _skinny_or_full_valid():
        # (B, 1) if it broadcasts there (common per-sample mask), else full (B, D).
        try:
            # Skinny mask is only B*4 bytes; make it f32 so its (TM, 1) tile is trivially legal.
            return jnp.broadcast_to(valid, (B, 1)).astype(jnp.float32)
        except ValueError:
            return jnp.broadcast_to(valid, (B, D))

    if D % 128 == 0:
        # Already lane-dense: keep (B, D) and a skinny mask (minimal streamed bytes).
        return _pallas_loss_2d(param_out, param_gt, _skinny_or_full_valid(),
                               out_dtype=out_dtype, compute_dtype=compute_dtype,
                               tile_m=tile_m, tile_n=tile_n)

    # D not lane-aligned (e.g. SMPL D=72): fold row-major into a lane-dense (R, C)
    # slab (free reshape, same linear memory) so stores are full-lane vst.  The mask
    # must be broadcast to full size, but stays in its narrow dtype (int8 for bool).
    Ntot = B * D
    C = next((c for c in _FLATTEN_WIDTHS if Ntot % c == 0), None)
    if C is not None:
        R = Ntot // C
        v_full = jnp.broadcast_to(valid, (B, D)).reshape(R, C)
        out = _pallas_loss_2d(param_out.reshape(R, C), param_gt.reshape(R, C), v_full,
                              out_dtype=out_dtype, compute_dtype=compute_dtype,
                              tile_m=tile_m, tile_n=tile_n)
        return out.reshape(B, D)

    # Rare fallback (B*D has no factor of 128): full-D blocks with masked partial
    # stores.  Correct, just not lane-dense.
    # TODO(synk): pad D to a multiple of 128 here if this shape ever shows up hot.
    return _pallas_loss_2d(param_out, param_gt, _skinny_or_full_valid(),
                           out_dtype=out_dtype, compute_dtype=compute_dtype,
                           tile_m=tile_m, tile_n=tile_n)


if __name__ == "__main__":
    key = jax.random.PRNGKey(0)
    k1, k2, k3 = jax.random.split(key, 3)

    # 1) Module-scale shapes (SMPL-style 72-dim pose params): tiny -> jnp dispatch path.
    B, D = 2, 72
    param_out = jax.random.normal(k1, (B, D), dtype=jnp.float32)
    param_gt = jax.random.normal(k2, (B, D), dtype=jnp.float32)
    valid = (jax.random.uniform(k3, (B, 1)) > 0.3).astype(jnp.float32)
    ref = jnp.abs(param_out - param_gt) * valid

    out = param_loss(param_out, param_gt, valid)
    jax.block_until_ready(out)
    assert out.shape == (B, D)
    assert jnp.allclose(out, ref, atol=1e-6), "dispatch path mismatch"

    # 2) Forced Pallas at the same tiny shape (no 128 factor -> single full block).
    out = param_loss(param_out, param_gt, valid, force_pallas=True)
    jax.block_until_ready(out)
    assert jnp.allclose(out, ref, atol=1e-6), "pallas fallback path mismatch"

    # 3) Lane-dense flatten path: D=72 folds into an (R, 1024) slab; bool mask stays
    #    narrow (int8) and is broadcast; tile_m=32 gives a multi-step row grid with a
    #    partial boundary block.
    B3, D3 = 1024, 72
    p1 = jax.random.normal(k1, (B3, D3), dtype=jnp.float32)
    p2 = jax.random.normal(k2, (B3, D3), dtype=jnp.float32)
    v3 = jax.random.uniform(k3, (B3, 1)) > 0.5
    ref3 = jnp.abs(p1 - p2) * v3.astype(jnp.float32)
    out3 = param_loss(p1, p2, v3, force_pallas=True, tile_m=32)
    jax.block_until_ready(out3)
    assert out3.shape == (B3, D3)
    assert jnp.allclose(out3, ref3, atol=1e-6), "lane-dense flatten path mismatch"

    # 4) Lane-aligned D with mixed dtypes: bf16 params stream untouched (cast in-kernel),
    #    (B,) f32 mask, multi-step row grid with a partial last block.
    B4, D4 = 40, 256
    p1 = jax.random.normal(k1, (B4, D4), dtype=jnp.bfloat16)
    p2 = jax.random.normal(k2, (B4, D4), dtype=jnp.bfloat16)
    v4 = (jax.random.uniform(k3, (B4,)) > 0.5).astype(jnp.float32)
    ref4 = jnp.abs(p1.astype(jnp.float32) - p2.astype(jnp.float32)) * v4[:, None]
    out4 = param_loss(p1, p2, v4, force_pallas=True, tile_m=16)
    jax.block_until_ready(out4)
    assert out4.dtype == jnp.float32
    assert jnp.allclose(out4, ref4, atol=1e-6), "lane-aligned mixed-dtype path mismatch"

    # 5) All-bf16: native bf16 compute on v6e/v7x, f32 compute on pre-v6 chips.
    p1 = jax.random.normal(k1, (64, 128), dtype=jnp.bfloat16)
    p2 = jax.random.normal(k2, (64, 128), dtype=jnp.bfloat16)
    v5 = (jax.random.uniform(k3, (64, 1)) > 0.5).astype(jnp.bfloat16)
    ref5 = jnp.abs(p1 - p2) * v5
    out5 = param_loss(p1, p2, v5, force_pallas=True)
    jax.block_until_ready(out5)
    assert out5.dtype == jnp.bfloat16
    assert jnp.allclose(out5.astype(jnp.float32), ref5.astype(jnp.float32),
                        atol=1e-2, rtol=1e-2), "bf16 path mismatch"

    print("KERNEL_OK")
</pallas_src>

<mosaic_0001>
module attributes {stable_mosaic.version = 11 : i64} {
  func.func @_param_loss_kernel(%arg0: i32, %arg1: i32, %arg2: memref<2x72xf32, #tpu.memory_space<vmem>>, %arg3: memref<2x72xf32, #tpu.memory_space<vmem>>, %arg4: memref<2x1xf32, #tpu.memory_space<vmem>>, %arg5: memref<2x72xf32, #tpu.memory_space<vmem>>) attributes {dimension_semantics = [#tpu.dimension_semantics<parallel>, #tpu.dimension_semantics<parallel>], iteration_bounds = array<i64: 1, 1>, scalar_prefetch = 0 : i64, scratch_operands = 0 : i64, tpu.core_type = #tpu.core_type<tc>, window_params = [{transform_indices = @transform_0, window_bounds = array<i64: 2, 72>}, {transform_indices = @transform_1, window_bounds = array<i64: 2, 72>}, {transform_indices = @transform_2, window_bounds = array<i64: 2, 1>}, {transform_indices = @transform_3, window_bounds = array<i64: 2, 72>}]} {
    %c0 = arith.constant 0 : index
    %c0_0 = arith.constant 0 : index
    %0 = vector.load %arg2[%c0, %c0_0] : memref<2x72xf32, #tpu.memory_space<vmem>>, vector<2x72xf32>
    %c0_1 = arith.constant 0 : index
    %c0_2 = arith.constant 0 : index
    %1 = vector.load %arg3[%c0_1, %c0_2] : memref<2x72xf32, #tpu.memory_space<vmem>>, vector<2x72xf32>
    %c0_3 = arith.constant 0 : index
    %c0_4 = arith.constant 0 : index
    %2 = vector.load %arg4[%c0_3, %c0_4] : memref<2x1xf32, #tpu.memory_space<vmem>>, vector<2x1xf32>
    %3 = arith.subf %0, %1 : vector<2x72xf32>
    %4 = math.absf %3 : vector<2x72xf32>
    %5 = vector.broadcast %2 : vector<2x1xf32> to vector<2x72xf32>
    %6 = arith.mulf %4, %5 : vector<2x72xf32>
    %c0_5 = arith.constant 0 : index
    %c0_6 = arith.constant 0 : index
    %7 = vector.load %arg5[%c0_5, %c0_6] : memref<2x72xf32, #tpu.memory_space<vmem>>, vector<2x72xf32>
    tpu.vector_store %arg5[%c0_5, %c0_6], %6 {strides = array<i32>} : memref<2x72xf32, #tpu.memory_space<vmem>>, vector<2x72xf32>,
    return
  }
  func.func @transform_0(%arg0: i32, %arg1: i32) -> (i32, i32) {
    %c0_i32 = arith.constant 0 : i32
    return %arg0, %arg1 : i32, i32
  }
  func.func @transform_1(%arg0: i32, %arg1: i32) -> (i32, i32) {
    %c0_i32 = arith.constant 0 : i32
    return %arg0, %arg1 : i32, i32
  }
  func.func @transform_2(%arg0: i32, %arg1: i32) -> (i32, i32) {
    %c0_i32 = arith.constant 0 : i32
    %c0_i32_0 = arith.constant 0 : i32
    return %arg0, %c0_i32 : i32, i32
  }
  func.func @transform_3(%arg0: i32, %arg1: i32) -> (i32, i32) {
    %c0_i32 = arith.constant 0 : i32
    return %arg0, %arg1 : i32, i32
  }
}

</mosaic_0001>

<bundles_post_ra>
// kernel: tpu_custom_call.1
= control target key start
LH: loop header
LB: loop body
LE: loop exit
PB: predicated region body
PF: predicated region fallthrough
CT: control target
= control target key end

     0   :  { %v69_v1 = vmov 0   ;;  %s112_s0 = inlined_call_operand.vmem [shape: f32[2,72], index: 0, kind: input, shape index: {}]   ;;  %s113_s1 = inlined_call_operand.vmem [shape: f32[2,72], index: 1, kind: input, shape index: {}]   ;;  %s114_s2 = inlined_call_operand.vmem [shape: f32[2,1], index: 2, kind: input, shape index: {}]   ;;  %s115_s3 = inlined_call_operand.hbm [shape: f32[2,72], index: 3, kind: output, shape index: {}]  }
   0x1   :  { %v17_v0 = vld [vmem:[%s114_s2] sm:$0x3]  ;;  %44 = vset.pattern.permute.xlu0 %v69_v1 }
   0x2   :  { %8 = vsyncpa [#allocation3], 0  ;;  %22 = vperm.xlu0 %44, %v17_v0   ;;  %v15_v2 = vld [vmem:[%s112_s0] sm:$0x3]  ;;  %s70_s18 = smov [#allocation2]   ;;  %vm26_vm0 = vcmask 582656  }
   0x3   :  { %v16_v3 = vld [vmem:[%s113_s1] sm:$0x3]  ;;  %s34_s19 = sshll.u32 %s70_s18, 4  ;;  %s35_s19 = int_to_ptr.vmem [resolvable:$true] %s34_s19 }
   0x4   :  { %v18_v4 = vsub.f32 %v15_v2, %v16_v3  ;;  %s45_s2 = scalar_lea.vmem %s35_s19, 32  ;;  %p50_p1 = scmp.lt.s32.totalorder %s35_s19, %s35_s19 }
   0x5   :  { %p46_p0 = scmp.ne.s32.totalorder %s35_s19, %s45_s2  ;;  %p51_p2 = scmp.lt.s32.totalorder %s45_s2, %s45_s2 }
   0x6   :  { %v19_v5 = vand.u32 2147483647, %v18_v4 }
   0x7   :  { %p52_p3 = por %p51_p2, %p50_p1 }
   0x9   :  { %p53_p4 = pnand %p52_p3, %p46_p0 }
  0x81   :  { %v23_v6 = vpop.permute.xlu0 %22 }
  0x82   :  { %v25_v7 = vmul.f32 %v23_v6, %v19_v5 }
  0x84   :  { %27 = vst.msk [vmem:[#allocation2] sm:$0x3] %vm26_vm0, %v25_v7 }
  0x85   :  { %56 = shalt.err (!%p53_p4)
}
  0x86   :  { %s57_s1 = scalar_lea.hbm %s115_s3, 32 }
  0x87   :  { %p58_p5 = scmp.ne.s32.totalorder %s115_s3, %s57_s1  ;;  %p61_p6 = scmp.lt.u32.totalorder %s57_s1, %s115_s3 }
  0x89   :  { %p63_p7 = pnand %p61_p6, %p58_p5 }
  0x8b   :  { %66 = shalt.err (!%p63_p7)
}
  0x8c   :  { %37 = dma.vmem_to_hbm [thread:$0]  %s35_s19, 32, %s115_s3, [#allocation3]  }
  0x8d   :  { %67 = dma.done.wait [#allocation3], 32  }
  0x8e   :  { %68 = vsyncadd [#allocation3], 4294967264 }
  0x8f   :  { %41 = vsyncpa [#allocation3], 1 }

</bundles_post_ra>
